<compile_context>
chip_gen: v6e
topology: v6e:2x2x1
jax: 0.10.0
libtpu: 0.0.40
codegen_flags: <defaults>
</compile_context>

<pallas_src>
import functools
import math

import numpy as np

import jax
import jax.numpy as jnp
from jax import lax
from jax.experimental import pallas as pl
from jax.experimental.pallas import tpu as pltpu

LN_EPS = 1e-5  # torch.nn.LayerNorm default
SQRT_2_OVER_PI = math.sqrt(2.0 / math.pi)
GELU_C = 0.044715


def _round_up(v: int, m: int) -> int:
    return (v + m - 1) // m * m


def _vmem_capacity_bytes() -> int:
    try:
        return int(pltpu.get_tpu_info().vmem_capacity_bytes)
    except Exception:
        return 64 << 20  # conservative default (v7x per-TensorCore VMEM)


def feedforward_kernel(x_ref, gamma_ref, beta_ref, w1_ref, b1_ref, w2_ref,
                       b2_ref, out_ref, xn_ref, acc_ref, *, d_true: int):
    j = pl.program_id(1)

    # --- once per token tile: LayerNorm -> VMEM scratch (matmul dtype, cast once),
    #     zero the f32 accumulator.
    @pl.when(j == 0)
    def _():
        x = x_ref[...].astype(jnp.float32)                    # (TM, Dp)
        inv_d = 1.0 / d_true
        mean = jnp.sum(x, axis=-1, keepdims=True) * inv_d
        diff = x - mean
        if d_true != x.shape[-1]:                             # static: padded lanes
            lane = lax.broadcasted_iota(jnp.int32, x.shape, 1)
            diff = jnp.where(lane < d_true, diff, 0.0)
        var = jnp.sum(diff * diff, axis=-1, keepdims=True) * inv_d
        xn = diff * lax.rsqrt(var + LN_EPS)
        xn = xn * gamma_ref[...] + beta_ref[...]              # padded lanes -> 0
        xn_ref[...] = xn.astype(xn_ref.dtype)                 # single cast pass
        acc_ref[...] = jnp.zeros_like(acc_ref)

    # --- ff chunk j: (TM, TF) slab of h = GELU(xn @ W1 + b1); accumulate h @ W2
    h = jnp.dot(xn_ref[...], w1_ref[...],
                preferred_element_type=jnp.float32) + b1_ref[...]
    h2 = h * h
    h = 0.5 * h * (1.0 + jnp.tanh(SQRT_2_OVER_PI * h * (1.0 + GELU_C * h2)))
    acc_ref[...] += jnp.dot(h.astype(w2_ref.dtype), w2_ref[...],
                            preferred_element_type=jnp.float32)

    # TODO(synk): dropout branch omitted (eval mode / training=False in the reference).

    # --- last ff chunk: + b2, + residual, one unmasked lane-dense store
    @pl.when(j == pl.num_programs(1) - 1)
    def _():
        out = acc_ref[...] + b2_ref[...] + x_ref[...].astype(jnp.float32)
        out_ref[...] = out.astype(out_ref.dtype)


def _plan_tiles(N, D, F, xb, cb, budget):
    """Choose (Dp, Fp, TM, TF, n_j, weights_resident) for the given VMEM budget."""
    Dp = _round_up(D, 128)
    Fp = _round_up(F, 128)
    Nt = _round_up(N, 16)          # >= native (16,128) bf16 tile

    def act_bytes(tm):
        return (2 * tm * Dp * xb   # x blocks (double-buffered)
                + 2 * tm * Dp * xb  # out blocks (double-buffered)
                + tm * Dp * cb      # xn scratch (matmul dtype)
                + tm * Dp * 4)      # f32 accumulator

    vec_bytes = 2 * (Fp + 3 * Dp) * 4   # gamma/beta/b1/b2 vectors (double-buffered, f32)

    def cands(sizes):
        out = []
        for t in sizes:
            t = min(t, Nt)
            if t >= 16 and t not in out:
                out.append(t)
        return out

    extra = (Nt,) if Nt <= 1024 else ()

    # --- Case 1: W1+W2 fully VMEM-resident (fetched from HBM exactly once,
    #     single-buffered via pl.Buffered(1)).
    w_res = 2 * Dp * Fp * cb
    for tm in cands(extra + (512, 384, 256, 128)):
        if w_res + act_bytes(tm) + vec_bytes <= budget:
            return Dp, Fp, tm, Fp, 1, True

    # --- Case 2: stream (Dp,TF)/(TF,Dp) weight chunks; maximize TM first so the
    #     re-streamed weights are amortized over as many tokens as possible.
    for tm in cands(extra + (1024, 768, 512, 384, 256, 128)):
        avail = budget - act_bytes(tm) - vec_bytes
        tf = min((avail // (4 * Dp * cb)) // 128 * 128, Fp)
        if tf >= 256 or (tf >= 128 and tm <= 256):
            n_j = pl.cdiv(Fp, tf)
            tf = _round_up(pl.cdiv(Fp, n_j), 128)
            return Dp, n_j * tf, tm, tf, n_j, False

    # --- Fallback: minimal tiles.
    tm = min(128, Nt)
    tf = 128
    n_j = pl.cdiv(Fp, tf)
    return Dp, n_j * tf, tm, tf, n_j, False


@functools.partial(jax.jit, static_argnames=("compute_dtype",))
def feedforward(x, gamma, beta, w1, b1, w2, b2, *, compute_dtype=jnp.bfloat16):
    """x: (B, S, D) -> (B, S, D).  LayerNorm -> W1 -> GELU -> W2 -> +residual."""
    B, S, D = x.shape
    F = w1.shape[1]
    N = B * S

    cdt = np.dtype(compute_dtype)
    xb = np.dtype(x.dtype).itemsize
    cb = cdt.itemsize

    # --- chip-aware VMEM budget (v5e/v6e: 128 MiB, v7x: 64 MiB per TC) ---
    vmem_cap = _vmem_capacity_bytes()
    budget = int(vmem_cap * 0.70)
    Dp, Fp, TM, TF, n_j, resident = _plan_tiles(N, D, F, xb, cb, budget)
    Np = _round_up(N, TM)

    # --- pad & cast (zeros are neutral: padded gamma/beta/biases/weight rows are 0) ---
    x2 = x.reshape(N, D)
    padded = (Np, Dp) != (N, D)
    if padded:
        x2 = jnp.pad(x2, ((0, Np - N), (0, Dp - D)))
    w1p = jnp.pad(w1.astype(cdt), ((0, Dp - D), (0, Fp - F)))
    w2p = jnp.pad(w2.astype(cdt), ((0, Fp - F), (0, Dp - D)))
    gammap = jnp.pad(gamma.astype(jnp.float32), (0, Dp - D)).reshape(1, Dp)
    betap = jnp.pad(beta.astype(jnp.float32), (0, Dp - D)).reshape(1, Dp)
    b1p = jnp.pad(b1.astype(jnp.float32), (0, Fp - F)).reshape(1, Fp)
    b2p = jnp.pad(b2.astype(jnp.float32), (0, Dp - D)).reshape(1, Dp)

    grid = (Np // TM, n_j)

    # --- VMEM limit: actual need + headroom, capped well below physical capacity ---
    w_bytes = 2 * Dp * Fp * cb if resident else 4 * Dp * TF * cb
    needed = (w_bytes
              + 4 * TM * Dp * xb           # x + out tiles (double-buffered)
              + TM * Dp * cb               # xn scratch
              + TM * Dp * 4                # f32 accumulator
              + 2 * (Fp + 3 * Dp) * 4)     # bias / affine vectors
    vmem_limit = min(int(vmem_cap * 0.90),
                     max(32 << 20, needed + needed // 4 + (2 << 20)))

    if resident:
        # Constant block index over the whole grid -> fetched from HBM exactly
        # once; single-buffer it so the constant block isn't double-buffered.
        w1_spec = pl.BlockSpec((Dp, TF), lambda i, j: (0, j),
                               pipeline_mode=pl.Buffered(1))
        w2_spec = pl.BlockSpec((TF, Dp), lambda i, j: (j, 0),
                               pipeline_mode=pl.Buffered(1))
    else:
        w1_spec = pl.BlockSpec((Dp, TF), lambda i, j: (0, j))
        w2_spec = pl.BlockSpec((TF, Dp), lambda i, j: (j, 0))

    kernel = functools.partial(feedforward_kernel, d_true=D)
    out = pl.pallas_call(
        kernel,
        out_shape=jax.ShapeDtypeStruct((Np, Dp), x.dtype),
        grid_spec=pltpu.PrefetchScalarGridSpec(
            num_scalar_prefetch=0,
            grid=grid,
            in_specs=[
                pl.BlockSpec((TM, Dp), lambda i, j: (i, 0)),   # x (resident over j)
                pl.BlockSpec((1, Dp), lambda i, j: (0, 0)),    # gamma
                pl.BlockSpec((1, Dp), lambda i, j: (0, 0)),    # beta
                w1_spec,                                       # w1 chunk / resident
                pl.BlockSpec((1, TF), lambda i, j: (0, j)),    # b1 chunk
                w2_spec,                                       # w2 chunk / resident
                pl.BlockSpec((1, Dp), lambda i, j: (0, 0)),    # b2
            ],
            out_specs=pl.BlockSpec((TM, Dp), lambda i, j: (i, 0)),
            scratch_shapes=[pltpu.VMEM((TM, Dp), cdt),          # normalized x (matmul dtype)
                            pltpu.VMEM((TM, Dp), jnp.float32)], # f32 accumulator
        ),
        compiler_params=pltpu.CompilerParams(
            dimension_semantics=("parallel", "arbitrary"),
            vmem_limit_bytes=vmem_limit,
        ),
        # Only alias when a padded intermediate exists; aliasing an un-donated
        # jit input would force XLA to insert a defensive copy.
        input_output_aliases={0: 0} if padded else {},
    )(x2, gammap, betap, w1p, b1p, w2p, b2p)

    if padded:
        out = out[:N, :D]
    return out.reshape(B, S, D)


def xavier_uniform(key, shape):
    fan_in, fan_out = shape
    bound = math.sqrt(6.0 / (fan_in + fan_out))
    return jax.random.uniform(key, shape, jnp.float32, minval=-bound, maxval=bound)


if __name__ == "__main__":
    # Small, lane-aligned shapes: (batch, seq_len, embed_dim), ff_dim = 2*embed_dim.
    B, S, D, F = 2, 8, 128, 256

    key = jax.random.PRNGKey(0)
    kx, kw1, kw2 = jax.random.split(key, 3)

    x = jax.random.normal(kx, (B, S, D), jnp.float32)

    # Deterministic parameter init (xavier_uniform, zero biases, unit LN affine).
    w1 = xavier_uniform(kw1, (D, F))
    b1 = jnp.zeros((F,), jnp.float32)
    w2 = xavier_uniform(kw2, (F, D))
    b2 = jnp.zeros((D,), jnp.float32)
    gamma = jnp.ones((D,), jnp.float32)
    beta = jnp.zeros((D,), jnp.float32)

    # Pure-JAX reference (same math as the torch module in eval mode).
    def ref(xi):
        xf = xi.astype(jnp.float32)
        mean = xf.mean(-1, keepdims=True)
        var = ((xf - mean) ** 2).mean(-1, keepdims=True)
        xn = (xf - mean) * lax.rsqrt(var + LN_EPS) * gamma + beta
        h = xn @ w1 + b1
        h = 0.5 * h * (1.0 + jnp.tanh(SQRT_2_OVER_PI * (h + GELU_C * h ** 3)))
        return (xf + h @ w2 + b2).astype(xi.dtype)

    expected = ref(x)

    # f32 matmul path: tight numerical check against the reference.
    out_f32 = feedforward(x, gamma, beta, w1, b1, w2, b2, compute_dtype=jnp.float32)
    jax.block_until_ready(out_f32)
    assert out_f32.shape == (B, S, D)
    err32 = float(jnp.max(jnp.abs(out_f32 - expected)))
    assert err32 < 1e-3, f"f32 max abs err {err32}"

    # Default bf16 matmul path (MXU-native on v5e/v6e/v7x): looser tolerance.
    out_bf16 = feedforward(x, gamma, beta, w1, b1, w2, b2)
    jax.block_until_ready(out_bf16)
    assert out_bf16.shape == (B, S, D)
    err16 = float(jnp.max(jnp.abs(out_bf16 - expected)))
    assert err16 < 1e-1, f"bf16 max abs err {err16}"

    print("KERNEL_OK")
</pallas_src>

<mosaic_0001>
module attributes {stable_mosaic.version = 11 : i64} {
  func.func @feedforward_kernel(%arg0: i32, %arg1: i32, %arg2: memref<16x128xf32, #tpu.memory_space<vmem>>, %arg3: memref<1x128xf32, #tpu.memory_space<vmem>>, %arg4: memref<1x128xf32, #tpu.memory_space<vmem>>, %arg5: memref<128x256xf32, #tpu.memory_space<vmem>>, %arg6: memref<1x256xf32, #tpu.memory_space<vmem>>, %arg7: memref<256x128xf32, #tpu.memory_space<vmem>>, %arg8: memref<1x128xf32, #tpu.memory_space<vmem>>, %arg9: memref<16x128xf32, #tpu.memory_space<vmem>>, %arg10: memref<16x128xf32, #tpu.memory_space<vmem>>, %arg11: memref<16x128xf32, #tpu.memory_space<vmem>>) attributes {dimension_semantics = [#tpu.dimension_semantics<parallel>, #tpu.dimension_semantics<arbitrary>], iteration_bounds = array<i64: 1, 1>, scalar_prefetch = 0 : i64, scratch_operands = 2 : i64, tpu.core_type = #tpu.core_type<tc>, window_params = [{transform_indices = @transform_0, window_bounds = array<i64: 16, 128>}, {pipeline_mode = #tpu.pipeline_mode<synchronous>, transform_indices = @transform_1, window_bounds = array<i64: 1, 128>}, {pipeline_mode = #tpu.pipeline_mode<synchronous>, transform_indices = @transform_2, window_bounds = array<i64: 1, 128>}, {pipeline_mode = #tpu.pipeline_mode<synchronous>, transform_indices = @transform_3, window_bounds = array<i64: 128, 256>}, {transform_indices = @transform_4, window_bounds = array<i64: 1, 256>}, {pipeline_mode = #tpu.pipeline_mode<synchronous>, transform_indices = @transform_5, window_bounds = array<i64: 256, 128>}, {pipeline_mode = #tpu.pipeline_mode<synchronous>, transform_indices = @transform_6, window_bounds = array<i64: 1, 128>}, {transform_indices = @transform_7, window_bounds = array<i64: 16, 128>}]} {
    %c0_i32 = arith.constant 0 : i32
    %0 = arith.cmpi eq, %arg1, %c0_i32 : i32
    %1 = arith.extui %0 : i1 to i32
    %c0_i32_0 = arith.constant 0 : i32
    %2 = arith.cmpi ne, %1, %c0_i32_0 : i32
    scf.if %2 {
      %c0_20 = arith.constant 0 : index
      %c0_21 = arith.constant 0 : index
      %31 = vector.load %arg2[%c0_20, %c0_21] : memref<16x128xf32, #tpu.memory_space<vmem>>, vector<16x128xf32>
      %cst_22 = arith.constant dense<0.000000e+00> : vector<16xf32>
      %32 = vector.multi_reduction <add>, %31, %cst_22 [1] : vector<16x128xf32> to vector<16xf32>
      %33 = vector.shape_cast %32 : vector<16xf32> to vector<16x1xf32>
      %cst_23 = arith.constant 7.812500e-03 : f32
      %34 = vector.broadcast %cst_23 : f32 to vector<16x1xf32>
      %35 = arith.mulf %33, %34 : vector<16x1xf32>
      %36 = vector.broadcast %35 : vector<16x1xf32> to vector<16x128xf32>
      %37 = arith.subf %31, %36 : vector<16x128xf32>
      %38 = arith.mulf %37, %37 : vector<16x128xf32>
      %cst_24 = arith.constant dense<0.000000e+00> : vector<16xf32>
      %39 = vector.multi_reduction <add>, %38, %cst_24 [1] : vector<16x128xf32> to vector<16xf32>
      %40 = vector.shape_cast %39 : vector<16xf32> to vector<16x1xf32>
      %cst_25 = arith.constant 7.812500e-03 : f32
      %41 = vector.broadcast %cst_25 : f32 to vector<16x1xf32>
      %42 = arith.mulf %40, %41 : vector<16x1xf32>
      %cst_26 = arith.constant 9.99999974E-6 : f32
      %43 = vector.broadcast %cst_26 : f32 to vector<16x1xf32>
      %44 = arith.addf %42, %43 : vector<16x1xf32>
      %45 = math.rsqrt %44 : vector<16x1xf32>
      %46 = vector.broadcast %45 : vector<16x1xf32> to vector<16x128xf32>
      %47 = arith.mulf %37, %46 : vector<16x128xf32>
      %c0_27 = arith.constant 0 : index
      %c0_28 = arith.constant 0 : index
      %48 = vector.load %arg3[%c0_27, %c0_28] : memref<1x128xf32, #tpu.memory_space<vmem>>, vector<1x128xf32>
      %49 = vector.broadcast %48 : vector<1x128xf32> to vector<16x128xf32>
      %50 = arith.mulf %47, %49 : vector<16x128xf32>
      %c0_29 = arith.constant 0 : index
      %c0_30 = arith.constant 0 : index
      %51 = vector.load %arg4[%c0_29, %c0_30] : memref<1x128xf32, #tpu.memory_space<vmem>>, vector<1x128xf32>
      %52 = vector.broadcast %51 : vector<1x128xf32> to vector<16x128xf32>
      %53 = arith.addf %50, %52 : vector<16x128xf32>
      %c0_31 = arith.constant 0 : index
      %c0_32 = arith.constant 0 : index
      %54 = vector.load %arg10[%c0_31, %c0_32] : memref<16x128xf32, #tpu.memory_space<vmem>>, vector<16x128xf32>
      tpu.vector_store %arg10[%c0_31, %c0_32], %53 {strides = array<i32>} : memref<16x128xf32, #tpu.memory_space<vmem>>, vector<16x128xf32>,
      %cst_33 = arith.constant 0.000000e+00 : f32
      %55 = vector.broadcast %cst_33 : f32 to vector<16x128xf32>
      %c0_34 = arith.constant 0 : index
      %c0_35 = arith.constant 0 : index
      %56 = vector.load %arg11[%c0_34, %c0_35] : memref<16x128xf32, #tpu.memory_space<vmem>>, vector<16x128xf32>
      tpu.vector_store %arg11[%c0_34, %c0_35], %55 {strides = array<i32>} : memref<16x128xf32, #tpu.memory_space<vmem>>, vector<16x128xf32>,
    } else {
    }
    %c0 = arith.constant 0 : index
    %c0_1 = arith.constant 0 : index
    %3 = vector.load %arg10[%c0, %c0_1] : memref<16x128xf32, #tpu.memory_space<vmem>>, vector<16x128xf32>
    %c0_2 = arith.constant 0 : index
    %c0_3 = arith.constant 0 : index
    %4 = vector.load %arg5[%c0_2, %c0_3] : memref<128x256xf32, #tpu.memory_space<vmem>>, vector<128x256xf32>
    %cst = arith.constant dense<0.000000e+00> : vector<16x256xf32>
    %5 = tpu.matmul %3, %4, %cst {dimension_numbers = #tpu.dot_dimension_numbers<[1], [0], [0], [1], [0, 0, 1, 1], [], []>} : vector<16x128xf32>, vector<128x256xf32>, vector<16x256xf32> -> vector<16x256xf32>
    %c0_4 = arith.constant 0 : index
    %c0_5 = arith.constant 0 : index
    %6 = vector.load %arg6[%c0_4, %c0_5] : memref<1x256xf32, #tpu.memory_space<vmem>>, vector<1x256xf32>
    %7 = vector.broadcast %6 : vector<1x256xf32> to vector<16x256xf32>
    %8 = arith.addf %5, %7 : vector<16x256xf32>
    %9 = arith.mulf %8, %8 : vector<16x256xf32>
    %cst_6 = arith.constant 5.000000e-01 : f32
    %10 = vector.broadcast %cst_6 : f32 to vector<16x256xf32>
    %11 = arith.mulf %10, %8 : vector<16x256xf32>
    %cst_7 = arith.constant 0.797884583 : f32
    %12 = vector.broadcast %cst_7 : f32 to vector<16x256xf32>
    %13 = arith.mulf %12, %8 : vector<16x256xf32>
    %cst_8 = arith.constant 4.471500e-02 : f32
    %14 = vector.broadcast %cst_8 : f32 to vector<16x256xf32>
    %15 = arith.mulf %14, %9 : vector<16x256xf32>
    %cst_9 = arith.constant 1.000000e+00 : f32
    %16 = vector.broadcast %cst_9 : f32 to vector<16x256xf32>
    %17 = arith.addf %16, %15 : vector<16x256xf32>
    %18 = arith.mulf %13, %17 : vector<16x256xf32>
    %19 = math.tanh %18 : vector<16x256xf32>
    %cst_10 = arith.constant 1.000000e+00 : f32
    %20 = vector.broadcast %cst_10 : f32 to vector<16x256xf32>
    %21 = arith.addf %20, %19 : vector<16x256xf32>
    %22 = arith.mulf %11, %21 : vector<16x256xf32>
    %c0_11 = arith.constant 0 : index
    %c0_12 = arith.constant 0 : index
    %23 = vector.load %arg11[%c0_11, %c0_12] : memref<16x128xf32, #tpu.memory_space<vmem>>, vector<16x128xf32>
    %c0_13 = arith.constant 0 : index
    %c0_14 = arith.constant 0 : index
    %24 = vector.load %arg7[%c0_13, %c0_14] : memref<256x128xf32, #tpu.memory_space<vmem>>, vector<256x128xf32>
    %cst_15 = arith.constant dense<0.000000e+00> : vector<16x128xf32>
    %25 = tpu.matmul %22, %24, %cst_15 {dimension_numbers = #tpu.dot_dimension_numbers<[1], [0], [0], [1], [0, 0, 1, 1], [], []>} : vector<16x256xf32>, vector<256x128xf32>, vector<16x128xf32> -> vector<16x128xf32>
    %26 = arith.addf %23, %25 : vector<16x128xf32>
    %c0_16 = arith.constant 0 : index
    %c0_17 = arith.constant 0 : index
    %27 = vector.load %arg11[%c0_16, %c0_17] : memref<16x128xf32, #tpu.memory_space<vmem>>, vector<16x128xf32>
    tpu.vector_store %arg11[%c0_16, %c0_17], %26 {strides = array<i32>} : memref<16x128xf32, #tpu.memory_space<vmem>>, vector<16x128xf32>,
    %c0_i32_18 = arith.constant 0 : i32
    %28 = arith.cmpi eq, %arg1, %c0_i32_18 : i32
    %29 = arith.extui %28 : i1 to i32
    %c0_i32_19 = arith.constant 0 : i32
    %30 = arith.cmpi ne, %29, %c0_i32_19 : i32
    scf.if %30 {
      %c0_20 = arith.constant 0 : index
      %c0_21 = arith.constant 0 : index
      %31 = vector.load %arg11[%c0_20, %c0_21] : memref<16x128xf32, #tpu.memory_space<vmem>>, vector<16x128xf32>
      %c0_22 = arith.constant 0 : index
      %c0_23 = arith.constant 0 : index
      %32 = vector.load %arg8[%c0_22, %c0_23] : memref<1x128xf32, #tpu.memory_space<vmem>>, vector<1x128xf32>
      %33 = vector.broadcast %32 : vector<1x128xf32> to vector<16x128xf32>
      %34 = arith.addf %31, %33 : vector<16x128xf32>
      %c0_24 = arith.constant 0 : index
      %c0_25 = arith.constant 0 : index
      %35 = vector.load %arg2[%c0_24, %c0_25] : memref<16x128xf32, #tpu.memory_space<vmem>>, vector<16x128xf32>
      %36 = arith.addf %34, %35 : vector<16x128xf32>
      %c0_26 = arith.constant 0 : index
      %c0_27 = arith.constant 0 : index
      %37 = vector.load %arg9[%c0_26, %c0_27] : memref<16x128xf32, #tpu.memory_space<vmem>>, vector<16x128xf32>
      tpu.vector_store %arg9[%c0_26, %c0_27], %36 {strides = array<i32>} : memref<16x128xf32, #tpu.memory_space<vmem>>, vector<16x128xf32>,
    } else {
    }
    return
  }
  func.func @transform_0(%arg0: i32, %arg1: i32) -> (i32, i32) {
    %c0_i32 = arith.constant 0 : i32
    %c0_i32_0 = arith.constant 0 : i32
    return %arg0, %c0_i32 : i32, i32
  }
  func.func @transform_1(%arg0: i32, %arg1: i32) -> (i32, i32) {
    %c0_i32 = arith.constant 0 : i32
    %c0_i32_0 = arith.constant 0 : i32
    %c0_i32_1 = arith.constant 0 : i32
    return %c0_i32, %c0_i32_0 : i32, i32
  }
  func.func @transform_2(%arg0: i32, %arg1: i32) -> (i32, i32) {
    %c0_i32 = arith.constant 0 : i32
    %c0_i32_0 = arith.constant 0 : i32
    %c0_i32_1 = arith.constant 0 : i32
    return %c0_i32, %c0_i32_0 : i32, i32
  }
  func.func @transform_3(%arg0: i32, %arg1: i32) -> (i32, i32) {
    %c0_i32 = arith.constant 0 : i32
    %c0_i32_0 = arith.constant 0 : i32
    return %c0_i32, %arg1 : i32, i32
  }
  func.func @transform_4(%arg0: i32, %arg1: i32) -> (i32, i32) {
    %c0_i32 = arith.constant 0 : i32
    %c0_i32_0 = arith.constant 0 : i32
    return %c0_i32, %arg1 : i32, i32
  }
  func.func @transform_5(%arg0: i32, %arg1: i32) -> (i32, i32) {
    %c0_i32 = arith.constant 0 : i32
    %c0_i32_0 = arith.constant 0 : i32
    return %arg1, %c0_i32 : i32, i32
  }
  func.func @transform_6(%arg0: i32, %arg1: i32) -> (i32, i32) {
    %c0_i32 = arith.constant 0 : i32
    %c0_i32_0 = arith.constant 0 : i32
    %c0_i32_1 = arith.constant 0 : i32
    return %c0_i32, %c0_i32_0 : i32, i32
  }
  func.func @transform_7(%arg0: i32, %arg1: i32) -> (i32, i32) {
    %c0_i32 = arith.constant 0 : i32
    %c0_i32_0 = arith.constant 0 : i32
    return %arg0, %c0_i32 : i32, i32
  }
}

</mosaic_0001>

<bundles_post_ra>
// kernel: feedforward.1
= control target key start
LH: loop header
LB: loop body
LE: loop exit
PB: predicated region body
PF: predicated region fallthrough
CT: control target
= control target key end

     0   :  { %12 = vsyncpa [#allocation5], 0  ;;  %s678_s0 = inlined_call_operand.hbm [shape: f32[16,128], index: 0, kind: input, shape index: {}]   ;;  %s679_s1 = inlined_call_operand.vmem [shape: f32[1,128], index: 1, kind: input, shape index: {}]   ;;  %s680_s2 = inlined_call_operand.vmem [shape: f32[1,128], index: 2, kind: input, shape index: {}]   ;;  %s681_s3 = inlined_call_operand.hbm [shape: f32[128,256], index: 3, kind: input, shape index: {}]   ;;  %s682_s4 = inlined_call_operand.vmem [shape: f32[1,256], index: 4, kind: input, shape index: {}]   ;;  %s683_s5 = inlined_call_operand.hbm [shape: f32[256,128], index: 5, kind: input, shape index: {}]   ;;  %s684_s6 = inlined_call_operand.vmem [shape: f32[1,128], index: 6, kind: input, shape index: {}]   ;;  %s685_s7 = inlined_call_operand.hbm [shape: f32[16,128], index: 7, kind: output, shape index: {}]  }
   0x1   :  { %13 = vsyncpa [#allocation8], 0 }
   0x2   :  { %14 = vsyncpa [#allocation6], 0  ;;  %s576_s24 = smov [#allocation7]  }
   0x3   :  { %s36_s25 = sshll.u32 %s576_s24, 4  ;;  %s37_s25 = int_to_ptr.vmem [resolvable:$true] %s36_s25 }
   0x4   :  { %s498_s26 = scalar_lea.vmem %s37_s25, 4096  ;;  %p503_p1 = scmp.lt.s32.totalorder %s37_s25, %s37_s25 }
   0x5   :  { %p499_p0 = scmp.ne.s32.totalorder %s37_s25, %s498_s26  ;;  %p504_p2 = scmp.lt.s32.totalorder %s498_s26, %s498_s26 }
   0x7   :  { %p505_p3 = por %p504_p2, %p503_p1 }
   0x9   :  { %p506_p4 = pnand %p505_p3, %p499_p0 }
   0xb   :  { %509 = shalt.err (!%p506_p4)
}
   0xc   :  { %s577_s27 = smov 256   ;;  %s578_s28 = smov 16  }
   0xd   :  { %42 = dma.hbm_to_vmem [thread:$0]  %s681_s3, 4096, %s37_s25, [#allocation8], %s577_s27, %s577_s27, %s578_s28  }
   0xe   :  { %s579_s8 = smov [#allocation4]  }
   0xf   :  { %s20_s9 = sshll.u32 %s579_s8, 4  ;;  %s21_s9 = int_to_ptr.vmem [resolvable:$true] %s20_s9 }
  0x10   :  { %s518_s10 = scalar_lea.vmem %s21_s9, 256  ;;  %p523_p6 = scmp.lt.s32.totalorder %s21_s9, %s21_s9 }
  0x11   :  { %p519_p5 = scmp.ne.s32.totalorder %s21_s9, %s518_s10  ;;  %p524_p7 = scmp.lt.s32.totalorder %s518_s10, %s518_s10 }
  0x13   :  { %p525_p8 = por %p524_p7, %p523_p6 }
  0x15   :  { %p526_p9 = pnand %p525_p8, %p519_p5 }
  0x17   :  { %529 = shalt.err (!%p526_p9)
}
  0x18   :  { %s580_s11 = smov 128   ;;  %s581_s12 = smov 8  }
  0x19   :  { %26 = dma.hbm_to_vmem [thread:$0]  %s678_s0, 256, %s21_s9, [#allocation5], %s580_s11, %s580_s11, %s581_s12  }
  0x1a   :  { %s582_s3 = smov [#allocation9]  }
  0x1b   :  { %s50_s15 = sshll.u32 %s582_s3, 4  ;;  %s51_s15 = int_to_ptr.vmem [resolvable:$true] %s50_s15 }
  0x1c   :  { %s538_s16 = scalar_lea.vmem %s51_s15, 4096  ;;  %p543_p11 = scmp.lt.s32.totalorder %s51_s15, %s51_s15 }
  0x1d   :  { %p539_p10 = scmp.ne.s32.totalorder %s51_s15, %s538_s16  ;;  %p544_p12 = scmp.lt.s32.totalorder %s538_s16, %s538_s16 }
  0x1f   :  { %p545_p13 = por %p544_p12, %p543_p11 }
  0x21   :  { %p546_p0 = pnand %p545_p13, %p539_p10 }
  0x23   :  { %549 = shalt.err (!%p546_p0)
}
  0x24   :  { %56 = dma.hbm_to_vmem [thread:$0]  %s683_s5, 4096, %s51_s15, [#allocation8], %s580_s11, %s580_s11, %s581_s12  }
  0x25   :  { %570 = dma.done.wait [#allocation5], 256  }
  0x26   :  { %571 = vsyncadd [#allocation5], 4294967040 }
  0x27   :  { %572 = dma.done.wait [#allocation8], 8192  }
  0x28   :  { %573 = vsyncadd [#allocation8], 4294959104  ;;  %v640_v0 = vld [vmem:[#allocation4] sm:$0xff]  ;;  %v643_v1 = vld [vmem:[#allocation4 + $0x8] sm:$0xff]  ;;  %v583_v31 = vmov 0.0   ;;  %s584_s22 = smov [#allocation10]  }
  0x29   :  { %74 = vadd.xlane.f32.xlu0 %v640_v0  ;;  %v151_v2 = vld [vmem:[#allocation7 + $0xf8] sm:$0xff]  ;;  %v150_v3 = vld [vmem:[#allocation7 + $0xf0] sm:$0xff]  ;;  %v149_v4 = vld [vmem:[#allocation7 + $0xe8] sm:$0xff]  ;;  %228 = vmatprep.mubr.f32.mxu0 %v583_v31  ;;  %s415_s23 = sshll.u32 %s584_s22, 4  ;;  %s416_s23 = int_to_ptr.vmem [resolvable:$true] %s415_s23 }
  0x2a   :  { %164 = vmatprep.subr.mxu0 %v151_v2  ;;  %v148_v5 = vld [vmem:[#allocation7 + $0xe0] sm:$0xff]  ;;  %v147_v6 = vld [vmem:[#allocation7 + $0xd8] sm:$0xff]  ;;  %v146_v7 = vld [vmem:[#allocation7 + $0xd0] sm:$0xff]  ;;  %s550_s24 = scalar_lea.vmem %s416_s23, 256  ;;  %p555_p2 = scmp.lt.s32.totalorder %s416_s23, %s416_s23 }
  0x2b   :  { %165 = vmatpush1.msra.mxu0 %v150_v3  ;;  %v145_v8 = vld [vmem:[#allocation7 + $0xc8] sm:$0xff]  ;;  %v144_v9 = vld [vmem:[#allocation7 + $0xc0] sm:$0xff]  ;;  %v143_v18 = vld [vmem:[#allocation7 + $0xb8] sm:$0xff]  ;;  %p551_p1 = scmp.ne.s32.totalorder %s416_s23, %s550_s24  ;;  %p556_p3 = scmp.lt.s32.totalorder %s550_s24, %s550_s24 }
  0x2c   :  { %166 = vmatprep.subr.mxu0 %v149_v4  ;;  %v142_v19 = vld [vmem:[#allocation7 + $0xb0] sm:$0xff]  ;;  %v141_v20 = vld [vmem:[#allocation7 + $0xa8] sm:$0xff]  ;;  %v140_v21 = vld [vmem:[#allocation7 + $0xa0] sm:$0xff] }
  0x2d   :  { %76 = vadd.xlane.f32.xlu0 %v643_v1  ;;  %167 = vmatpush1.msra.mxu0 %v148_v5  ;;  %v139_v22 = vld [vmem:[#allocation7 + $0x98] sm:$0xff]  ;;  %v138_v23 = vld [vmem:[#allocation7 + $0x90] sm:$0xff]  ;;  %v137_v24 = vld [vmem:[#allocation7 + $0x88] sm:$0xff]  ;;  %p557_p4 = por %p556_p3, %p555_p2 }
  0x2e   :  { %168 = vmatprep.subr.mxu0 %v147_v6  ;;  %v136_v25 = vld [vmem:[#allocation7 + $0x80] sm:$0xff]  ;;  %v135_v26 = vld [vmem:[#allocation7 + $0x78] sm:$0xff]  ;;  %v134_v27 = vld [vmem:[#allocation7 + $0x70] sm:$0xff] }
  0x2f   :  { %169 = vmatpush1.msra.mxu0 %v146_v7  ;;  %v133_v28 = vld [vmem:[#allocation7 + $0x68] sm:$0xff]  ;;  %v132_v29 = vld [vmem:[#allocation7 + $0x60] sm:$0xff]  ;;  %v131_v30 = vld [vmem:[#allocation7 + $0x58] sm:$0xff]  ;;  %p558_p5 = pnand %p557_p4, %p551_p1 }
  0x30   :  { %170 = vmatprep.subr.mxu0 %v145_v8  ;;  %v130_v32 = vld [vmem:[#allocation7 + $0x50] sm:$0xff]  ;;  %v129_v33 = vld [vmem:[#allocation7 + $0x48] sm:$0xff]  ;;  %v128_v34 = vld [vmem:[#allocation7 + $0x40] sm:$0xff] }
  0x31   :  { %171 = vmatpush1.msra.mxu0 %v144_v9  ;;  %v127_v35 = vld [vmem:[#allocation7 + $0x38] sm:$0xff]  ;;  %v126_v36 = vld [vmem:[#allocation7 + $0x30] sm:$0xff]  ;;  %v125_v37 = vld [vmem:[#allocation7 + $0x28] sm:$0xff] }
  0x32   :  { %172 = vmatprep.subr.mxu0 %v143_v18  ;;  %v124_v38 = vld [vmem:[#allocation7 + $0x20] sm:$0xff]  ;;  %v123_v39 = vld [vmem:[#allocation7 + $0x18] sm:$0xff]  ;;  %v122_v40 = vld [vmem:[#allocation7 + $0x10] sm:$0xff] }
  0x33   :  { %173 = vmatpush1.msra.mxu0 %v142_v19  ;;  %v121_v41 = vld [vmem:[#allocation7 + $0x8] sm:$0xff]  ;;  %v120_v42 = vld [vmem:[#allocation7] sm:$0xff]  ;;  %v428_v50 = vld [vmem:[%s679_s1] ss:$0 sm:$0xff] }
  0x34   :  { %174 = vmatprep.subr.mxu0 %v141_v20  ;;  %v429_v52 = vld [vmem:[%s680_s2] ss:$0 sm:$0xff]  ;;  %v310_v59 = vld [vmem:[#allocation9 + $0xf8] sm:$0xff]  ;;  %v308_v63 = vld [vmem:[#allocation9 + $0xe8] sm:$0xff] }
  0x35   :  { %175 = vmatpush1.msra.mxu0 %v140_v21  ;;  %431 = vmatprep.subr.mxu1 %v310_v59  ;;  %v294_v60 = vld [vmem:[#allocation9 + $0x78] sm:$0xff]  ;;  %v309_v61 = vld [vmem:[#allocation9 + $0xf0] sm:$0xff]  ;;  %v292_v2 = vld [vmem:[#allocation9 + $0x68] sm:$0xff] }
  0x36   :  { %176 = vmatprep.subr.mxu0 %v139_v22  ;;  %432 = vmatpush3.msra.mxu1 %v294_v60  ;;  %v293_v62 = vld [vmem:[#allocation9 + $0x70] sm:$0xff]  ;;  %v307_v3 = vld [vmem:[#allocation9 + $0xe0] sm:$0xff]  ;;  %v306_v5 = vld [vmem:[#allocation9 + $0xd8] sm:$0xff] }
  0x37   :  { %177 = vmatpush1.msra.mxu0 %v138_v23  ;;  %433 = vmatprep.subr.mxu1 %v309_v61  ;;  %v291_v4 = vld [vmem:[#allocation9 + $0x60] sm:$0xff]  ;;  %v290_v6 = vld [vmem:[#allocation9 + $0x58] sm:$0xff]  ;;  %v305_v7 = vld [vmem:[#allocation9 + $0xd0] sm:$0xff] }
  0x38   :  { %178 = vmatprep.subr.mxu0 %v137_v24  ;;  %434 = vmatpush3.msra.mxu1 %v293_v62  ;;  %v289_v8 = vld [vmem:[#allocation9 + $0x50] sm:$0xff]  ;;  %v304_v9 = vld [vmem:[#allocation9 + $0xc8] sm:$0xff]  ;;  %v299_v19 = vld [vmem:[#allocation9 + $0xa0] sm:$0xff] }
  0x39   :  { %179 = vmatpush1.msra.mxu0 %v136_v25  ;;  %435 = vmatprep.subr.mxu1 %v308_v63  ;;  %v284_v18 = vld [vmem:[#allocation9 + $0x28] sm:$0xff]  ;;  %v283_v20 = vld [vmem:[#allocation9 + $0x20] sm:$0xff]  ;;  %v298_v21 = vld [vmem:[#allocation9 + $0x98] sm:$0xff] }
  0x3a   :  { %180 = vmatprep.subr.mxu0 %v135_v26  ;;  %436 = vmatpush3.msra.mxu1 %v292_v2  ;;  %v282_v22 = vld [vmem:[#allocation9 + $0x18] sm:$0xff]  ;;  %v297_v23 = vld [vmem:[#allocation9 + $0x90] sm:$0xff]  ;;  %v296_v25 = vld [vmem:[#allocation9 + $0x88] sm:$0xff] }
  0x3b   :  { %181 = vmatpush1.msra.mxu0 %v134_v27  ;;  %437 = vmatprep.subr.mxu1 %v307_v3  ;;  %v281_v24 = vld [vmem:[#allocation9 + $0x10] sm:$0xff]  ;;  %v280_v26 = vld [vmem:[#allocation9 + $0x8] sm:$0xff]  ;;  %v295_v27 = vld [vmem:[#allocation9 + $0x80] sm:$0xff] }
  0x3c   :  { %182 = vmatprep.subr.mxu0 %v133_v28  ;;  %438 = vmatpush3.msra.mxu1 %v291_v4  ;;  %v279_v28 = vld [vmem:[#allocation9] sm:$0xff] }
  0x3d   :  { %183 = vmatpush1.msra.mxu0 %v132_v29  ;;  %439 = vmatprep.subr.mxu1 %v306_v5  ;;  %v154_v29 = vlaneseq }
  0x3e   :  { %184 = vmatprep.subr.mxu0 %v131_v30  ;;  %440 = vmatpush3.msra.mxu1 %v290_v6 }
  0x3f   :  { %185 = vmatpush1.msra.mxu0 %v130_v32  ;;  %441 = vmatprep.subr.mxu1 %v305_v7  ;;  %v155_v30 = vshrl.u32 %v154_v29, 7  ;;  %v152_v32 = vld [vmem:[%s682_s4] sm:$0x3] }
  0x40   :  { %186 = vmatprep.subr.mxu0 %v129_v33  ;;  %442 = vmatpush3.msra.mxu1 %v289_v8 }
  0x41   :  { %187 = vmatpush1.msra.mxu0 %v128_v34  ;;  %443 = vmatprep.subr.mxu1 %v304_v9  ;;  %v160_v33 = vsub.s32 1, %v155_v30 }
  0x42   :  { %188 = vmatprep.subr.mxu0 %v127_v35 }
  0x43   :  { %189 = vmatpush1.msra.mxu0 %v126_v36  ;;  %v161_v35 = vrot.slane %v152_v32, %v160_v33 }
  0x44   :  { %190 = vmatprep.subr.mxu0 %v125_v37 }
  0x45   :  { %191 = vmatpush1.msra.mxu0 %v124_v38 }
  0x46   :  { %192 = vmatprep.subr.mxu0 %v123_v39 }
  0x47   :  { %193 = vmatpush1.msra.mxu0 %v122_v40 }
  0x48   :  { %194 = vmatprep.subr.mxu0 %v121_v41 }
  0x49   :  { %195 = vmatpush1.msra.mxu0 %v120_v42 }
  0xb2   :  { %v75_v10 = vpop.xlane.xlu0 %74 }
  0xb3   :  { %v78_v11 = vmul.f32 0.0078125, %v75_v10  ;;  %v288_v10 = vld [vmem:[#allocation9 + $0x48] sm:$0xff] }
  0xb4   :  { %444 = vmatpush3.msra.mxu1 %v288_v10 }
  0xb5   :  { %v647_v12 = vsub.f32 %v640_v0, %v78_v11  ;;  %v303_v11 = vld [vmem:[#allocation9 + $0xc0] sm:$0xff] }
  0xb6   :  { %v77_v13 = vpop.xlane.xlu0 %76  ;;  %445 = vmatprep.subr.mxu1 %v303_v11 }
  0xb7   :  { %v79_v14 = vmul.f32 0.0078125, %v77_v13  ;;  %v82_v15 = vmul.f32 %v647_v12, %v647_v12  ;;  %v302_v13 = vld [vmem:[#allocation9 + $0xb8] sm:$0xff] }
  0xb9   :  { %v652_v16 = vsub.f32 %v643_v1, %v79_v14  ;;  %84 = vadd.xlane.f32.xlu1 %v82_v15  ;;  %v286_v14 = vld [vmem:[#allocation9 + $0x38] sm:$0xff]  ;;  %v301_v15 = vld [vmem:[#allocation9 + $0xb0] sm:$0xff] }
  0xbb   :  { %v83_v17 = vmul.f32 %v652_v16, %v652_v16 }
  0xbd   :  { %86 = vadd.xlane.f32.xlu1 %v83_v17  ;;  %v300_v17 = vld [vmem:[#allocation9 + $0xa8] sm:$0xff] }
 0x142   :  { %v85_v43 = vpop.xlane.xlu1 %84 }
 0x143   :  { %v88_v44 = vmul.f32 0.0078125, %v85_v43 }
 0x145   :  { %v90_v45 = vadd.f32 1e-05, %v88_v44 }
 0x146   :  { %v87_v46 = vpop.xlane.xlu1 %86 }
 0x147   :  { %478 = vrsqrt.f32 %v90_v45  ;;  %v89_v47 = vmul.f32 0.0078125, %v87_v46 }
 0x149   :  { %v91_v48 = vadd.f32 1e-05, %v89_v47 }
 0x14b   :  { %480 = vrsqrt.f32 %v91_v48 }
 0x154   :  { %v479_v49 = vpop.eup %478 }
 0x155   :  { %v94_v51 = vmul.f32 %v479_v49, %v647_v12  ;;  %v287_v12 = vld [vmem:[#allocation9 + $0x40] sm:$0xff] }
 0x156   :  { %446 = vmatpush3.msra.mxu1 %v287_v12 }
 0x157   :  { %v103_v53 = vmul.f32 %v428_v50, %v94_v51  ;;  %447 = vmatprep.subr.mxu1 %v302_v13 }
 0x158   :  { %v481_v54 = vpop.eup %480  ;;  %448 = vmatpush3.msra.mxu1 %v286_v14 }
 0x159   :  { %v112_v55 = vadd.f32 %v429_v52, %v103_v53  ;;  %v95_v56 = vmul.f32 %v481_v54, %v652_v16  ;;  %v285_v16 = vld [vmem:[#allocation9 + $0x30] sm:$0xff]  ;;  %449 = vmatprep.subr.mxu1 %v301_v15 }
 0x15a   :  { %450 = vmatpush3.msra.mxu1 %v285_v16 }
 0x15b   :  { %229 = vmatmul.mubr.f32.vlgmr.msra.gmra.mxu0 %v112_v55  ;;  %v104_v57 = vmul.f32 %v428_v50, %v95_v56  ;;  %451 = vmatprep.subr.mxu1 %v300_v17 }
 0x15c   :  { %234 = vmatprep.mubr.f32.mxu0 %v583_v31  ;;  %452 = vmatpush3.msra.mxu1 %v284_v18  ;;  %v156_v31 = vsub.s32 0, %v155_v30 }
 0x15d   :  { %v113_v58 = vadd.f32 %v429_v52, %v104_v57  ;;  %453 = vmatprep.subr.mxu1 %v299_v19 }
 0x15e   :  { %454 = vmatpush3.msra.mxu1 %v283_v20  ;;  %v157_v34 = vrot.slane %v152_v32, %v156_v31  ;;  %v430_v20 = vld [vmem:[%s684_s6] ss:$0 sm:$0xff] }
 0x15f   :  { %235 = vmatmul.mubr.f32.gmra.mxu0 %v113_v58  ;;  %455 = vmatprep.subr.mxu1 %v298_v21 }
 0x160   :  { %456 = vmatpush3.msra.mxu1 %v282_v22 }
 0x161   :  { %457 = vmatprep.subr.mxu1 %v297_v23 }
 0x162   :  { %458 = vmatpush3.msra.mxu1 %v281_v24 }
 0x163   :  { %459 = vmatprep.subr.mxu1 %v296_v25 }
 0x164   :  { %460 = vmatpush3.msra.mxu1 %v280_v26 }
 0x165   :  { %461 = vmatprep.subr.mxu1 %v295_v27 }
 0x166   :  { %462 = vmatpush3.msra.mxu1 %v279_v28 }
 0x21b   :  { %v230_v36 = vpop.f32.mrf.mxu0 }
 0x21c   :  { %v231_v37 = vadd.f32 %v230_v36, %v157_v34 }
 0x21d   :  { %v232_v38 = vpop.f32.mrf.mxu0 }
 0x21e   :  { %v241_v39 = vmul.f32 %v231_v37, %v231_v37  ;;  %v233_v40 = vadd.f32 %v232_v38, %v161_v35  ;;  %v249_v46 = vmul.f32 0.7978846, %v231_v37  ;;  %v245_v8 = vmul.f32 0.5, %v231_v37 }
 0x21f   :  { %v236_v41 = vpop.f32.mrf.mxu0 }
 0x220   :  { %v253_v42 = vmul.f32 0.044715, %v241_v39  ;;  %v242_v43 = vmul.f32 %v233_v40, %v233_v40  ;;  %v237_v44 = vadd.f32 %v236_v41, %v157_v34  ;;  %v250_v52 = vmul.f32 0.7978846, %v233_v40 }
 0x221   :  { %v238_v45 = vpop.f32.mrf.mxu0  ;;  %v246_v5 = vmul.f32 0.5, %v233_v40 }
 0x222   :  { %v257_v47 = vadd.f32 1.0, %v253_v42  ;;  %v254_v48 = vmul.f32 0.044715, %v242_v43  ;;  %v243_v49 = vmul.f32 %v237_v44, %v237_v44  ;;  %v239_v50 = vadd.f32 %v238_v45, %v161_v35 }
 0x223   :  { %v251_v56 = vmul.f32 0.7978846, %v237_v44  ;;  %v247_v15 = vmul.f32 0.5, %v237_v44 }
 0x224   :  { %v261_v51 = vmul.f32 %v257_v47, %v249_v46  ;;  %v258_v53 = vadd.f32 1.0, %v254_v48  ;;  %v255_v54 = vmul.f32 0.044715, %v243_v49  ;;  %v244_v55 = vmul.f32 %v239_v50, %v239_v50 }
 0x225   :  { %v252_v61 = vmul.f32 0.7978846, %v239_v50  ;;  %v248_v13 = vmul.f32 0.5, %v239_v50 }
 0x226   :  { %482 = vtanh.f32 %v261_v51  ;;  %v259_v57 = vadd.f32 1.0, %v255_v54  ;;  %v262_v58 = vmul.f32 %v258_v53, %v250_v52  ;;  %v256_v59 = vmul.f32 0.044715, %v244_v55 }
 0x228   :  { %v263_v60 = vmul.f32 %v259_v57, %v251_v56  ;;  %484 = vtanh.f32 %v262_v58  ;;  %v260_v62 = vadd.f32 1.0, %v256_v59 }
 0x22a   :  { %486 = vtanh.f32 %v263_v60  ;;  %v264_v63 = vmul.f32 %v260_v62, %v252_v61 }
 0x22c   :  { %488 = vtanh.f32 %v264_v63 }
 0x233   :  { %v483_v2 = vpop.eup %482 }
 0x234   :  { %v269_v4 = vadd.f32 1.0, %v483_v2 }
 0x235   :  { %v485_v3 = vpop.eup %484 }
 0x236   :  { %v270_v6 = vadd.f32 1.0, %v485_v3  ;;  %v273_v10 = vmul.f32 %v269_v4, %v245_v8 }
 0x237   :  { %v487_v7 = vpop.eup %486 }
 0x238   :  { %v274_v9 = vmul.f32 %v270_v6, %v246_v5  ;;  %v271_v12 = vadd.f32 1.0, %v487_v7 }
 0x239   :  { %v489_v11 = vpop.eup %488 }
 0x23a   :  { %375 = vmatprep.mubr.f32.mxu1 %v274_v9  ;;  %v272_v14 = vadd.f32 1.0, %v489_v11  ;;  %v275_v17 = vmul.f32 %v271_v12, %v247_v15 }
 0x23b   :  { %376 = vmatmul.mubr.f32.vlgmr.msra.gmra.mxu1 %v273_v10 }
 0x23c   :  { %v276_v16 = vmul.f32 %v272_v14, %v248_v13 }
 0x23e   :  { %380 = vmatprep.mubr.f32.mxu1 %v276_v16 }
 0x23f   :  { %381 = vmatmul.mubr.f32.gmra.mxu1 %v275_v17 }
 0x2fb   :  { %v463_v18 = vpop.f32.mrf.mxu1 }
 0x2fd   :  { %v464_v19 = vpop.f32.mrf.mxu1 }
 0x2fe   :  { %v465_v21 = vadd.f32 %v464_v19, %v463_v18 }
 0x2ff   :  { %v466_v23 = vpop.f32.mrf.mxu1 }
 0x300   :  { %v402_v22 = vadd.f32 %v465_v21, %v430_v20 }
 0x301   :  { %v467_v25 = vpop.f32.mrf.mxu1 }
 0x302   :  { %v406_v24 = vadd.f32 %v402_v22, %v640_v0  ;;  %v468_v26 = vadd.f32 %v467_v25, %v466_v23 }
 0x304   :  { %408 = vst [vmem:[#allocation10] sm:$0xff] %v406_v24  ;;  %v403_v27 = vadd.f32 %v468_v26, %v430_v20 }
 0x306   :  { %v407_v28 = vadd.f32 %v403_v27, %v643_v1 }
 0x308   :  { %409 = vst [vmem:[#allocation10 + $0x8] sm:$0xff] %v407_v28 }
 0x309   :  { %561 = shalt.err (!%p558_p5)
}
 0x30a   :  { %421 = dma.vmem_to_hbm [thread:$0]  %s416_s23, 256, %s685_s7, [#allocation6], %s580_s11, %s580_s11, %s581_s12  }
 0x30b   :  { %574 = dma.done.wait [#allocation6], 256  }
 0x30c   :  { %575 = vsyncadd [#allocation6], 4294967040 }
 0x30d   :  { %425 = vsyncpa [#allocation5], 1 }
 0x30e   :  { %426 = vsyncpa [#allocation8], 1 }
 0x30f   :  { %427 = vsyncpa [#allocation6], 1 }

</bundles_post_ra>
